<compile_context>
chip_gen: v6e
topology: v6e:2x2x1
jax: 0.10.0
libtpu: 0.0.40
codegen_flags: <defaults>
</compile_context>

<pallas_src>
import math

import jax
import jax.numpy as jnp
from jax.experimental import pallas as pl
from jax.experimental.pallas import tpu as pltpu


def _cdiv(a, b):
    return -(-a // b)


def _round_up(x, m):
    return _cdiv(x, m) * m


# ------------------------------------------------------------------------------ kernel


def value_net_kernel(x_ref, w1_ref, b1_ref, w2_ref, b2_ref, w3_ref, b3_ref, o_ref):
    """One batch tile of relu(x@W1+b1) -> relu(@W2+b2) -> @w3+b3, stored lane-major."""
    mxu_dtype = w1_ref.dtype                  # bf16 by default; accumulation stays f32

    # Layer 1: MXU matmul (bf16 in, f32 acc); bias + ReLU in f32 on the VPU.
    h1 = jnp.dot(x_ref[...].astype(mxu_dtype), w1_ref[...],
                 preferred_element_type=jnp.float32)
    h1 = jnp.maximum(h1 + b1_ref[...], 0.0)

    # Layer 2: same pattern.
    h2 = jnp.dot(h1.astype(mxu_dtype), w2_ref[...],
                 preferred_element_type=jnp.float32)
    h2 = jnp.maximum(h2 + b2_ref[...], 0.0)

    # Layer 3 (hidden -> 1), emitted lane-major: (1, hidden) @ (hidden, bt) -> (1, bt)
    # so the store below is a dense full-lane row instead of a (bt, 1) column of masked
    # vst.msk partial stores.  w3/b3 stay f32 (tiny matmul; the MXU has plenty of slack).
    out_row = jnp.dot(w3_ref[...], h2.T, preferred_element_type=jnp.float32)
    out_row = out_row + b3_ref[...]

    o_ref[0] = out_row.astype(o_ref.dtype)    # o_ref block is (1, 1, bt)


# --------------------------------------------------------------------- wrapper helpers


def _tpu_topology():
    """(tensorcore_count, per-core VMEM bytes); conservative defaults if unknown."""
    cores, vmem = 1, 128 << 20
    try:
        info = pltpu.get_tpu_info()
    except Exception:                          # capability probe only; keep defaults
        return cores, vmem
    vmem = int(getattr(info, "vmem_capacity_bytes", vmem) or vmem)
    for name in ("num_cores", "core_count", "tensorcore_count", "num_tensorcores"):
        val = getattr(info, name, None)
        if val:
            cores = int(val)
            break
    return cores, vmem


def _pad_hidden(params, lane_multiple=128):
    """Zero-pad hidden_dim to a lane multiple (exact: padded units stay identically 0).

    128 keeps every vreg lane / MXU column busy; callers targeting the 256-wide v6e/v7x
    MXU with hidden < 256 may prefer lane_multiple=256.  In a training loop, pad the
    params once outside the step instead of per call (this is a no-op when aligned).
    """
    w1, b1, w2, b2, w3, b3 = params
    hidden = w1.shape[1]
    hidden_p = _round_up(hidden, lane_multiple)
    if hidden_p == hidden:
        return params, hidden_p
    p = hidden_p - hidden
    padded = (jnp.pad(w1, ((0, 0), (0, p))), jnp.pad(b1, ((0, 0), (0, p))),
              jnp.pad(w2, ((0, p), (0, p))), jnp.pad(b2, ((0, 0), (0, p))),
              jnp.pad(w3, ((0, 0), (0, p))), b3)
    return padded, hidden_p


def _choose_batch_tile(B, per_row_bytes, weight_vmem_bytes, hidden_p, num_cores,
                       vmem_capacity):
    """Return (batch_tile, num_tiles) with num_tiles = cdiv(B, batch_tile)."""
    budget = min(vmem_capacity // 2, 64 << 20)        # leave room for XLA neighbours
    max_bt = (budget - weight_vmem_bytes) // max(per_row_bytes, 1)
    max_bt = max(8, min(1024, (max_bt // 8) * 8))

    if B <= max_bt and (num_cores == 1 or B <= 256):
        # One grid step: per-step overhead (~0.35us) dominates small RL batches and a
        # second step only pays off on multi-TensorCore (v7x) chips with enough rows.
        return _round_up(B, 8), 1

    # Large batches: big lane-aligned tiles.  Small hidden -> even bigger tiles, since
    # per-step overhead dominates when per-tile MXU time is sub-microsecond.
    cap = 1024 if hidden_p <= 512 else 512
    bt = max(128, (min(max_bt, cap) // 128) * 128)
    tiles = _cdiv(B, bt)
    if num_cores > 1 and tiles % num_cores:
        # Keep the step count a multiple of the core count so the "parallel" batch
        # axis stays balanced across v7x's two TensorCores.
        tiles = _round_up(tiles, num_cores)
        bt = _round_up(_cdiv(B, tiles), 8)
        tiles = _cdiv(B, bt)
    return bt, tiles


def _forward_impl(state, params, *, batch_tile, weight_dtype, num_cores, vmem_capacity):
    (w1, b1, w2, b2, w3, b3), hidden_p = _pad_hidden(params)
    B, state_dim = state.shape

    det_cores, det_vmem = _tpu_topology()
    num_cores = det_cores if num_cores is None else int(num_cores)
    vmem_capacity = det_vmem if vmem_capacity is None else int(vmem_capacity)

    # MXU inputs for the two big matmuls go in as weight_dtype (bf16 by default, f32
    # for exact parity, float8_e4m3fn on v7x); biases and the head row stay f32.
    w1c = w1.astype(weight_dtype)
    w2c = w2.astype(weight_dtype)
    wbytes = jnp.dtype(weight_dtype).itemsize
    x_bytes = jnp.dtype(state.dtype).itemsize

    # Default pipeliner keeps 2 buffers per operand (grid-invariant weight blocks are
    # not re-fetched, they just cost VMEM twice).
    weight_vmem = 2 * ((state_dim + hidden_p) * hidden_p * wbytes
                       + (3 * hidden_p + 1) * 4)
    # Per batch row: double-buffered input tile + f32 intermediates (h1, h2, h2^T,
    # matmul staging) + double-buffered lane-dense output row.
    per_row = 2 * state_dim * x_bytes + 4 * hidden_p * 4 + 2 * 4

    if batch_tile is None:
        bt, tiles = _choose_batch_tile(B, per_row, weight_vmem, hidden_p,
                                       num_cores, vmem_capacity)
    else:
        bt = max(8, _round_up(int(batch_tile), 8))
        bt = min(bt, _round_up(B, 8))
        tiles = _cdiv(B, bt)

    const = lambda i: (0, 0)
    in_specs = [
        pl.BlockSpec((bt, state_dim), lambda i: (i, 0)),   # state tile (pipelined)
        pl.BlockSpec((state_dim, hidden_p), const),        # W1 (weight_dtype)
        pl.BlockSpec((1, hidden_p), const),                # b1 (f32)
        pl.BlockSpec((hidden_p, hidden_p), const),         # W2 (weight_dtype)
        pl.BlockSpec((1, hidden_p), const),                # b2 (f32)
        pl.BlockSpec((1, hidden_p), const),                # w3 row (f32)
        pl.BlockSpec((1, 1), const),                       # b3 (f32)
    ]
    # Lane-dense output: one (1, bt) row per grid step; reshaped to (B, 1) below.
    out_specs = pl.BlockSpec((1, 1, bt), lambda i: (i, 0, 0))
    out_shape = jax.ShapeDtypeStruct((tiles, 1, bt), jnp.float32)

    # Advisory estimate so XLA can schedule neighbouring ops around the custom call.
    flops = 2 * tiles * bt * hidden_p * (state_dim + hidden_p + 1)
    bytes_accessed = (B * state_dim * x_bytes + tiles * bt * 4
                      + (state_dim + hidden_p) * hidden_p * wbytes
                      + (3 * hidden_p + 1) * 4)
    cost = pl.CostEstimate(flops=flops, transcendentals=0,
                           bytes_accessed=bytes_accessed)

    # ~1.5x actual need + small headroom (no 32 MiB floor), capped by per-core VMEM.
    # TODO(synk): for hidden_dim >= ~2048 on v7x (64 MiB VMEM), tile the K dim of W2
    # over an extra "arbitrary" grid axis with an f32 accumulator instead of holding
    # the whole (hidden, hidden) block resident.
    vmem_need = weight_vmem + bt * per_row
    vmem_limit = int(min(vmem_capacity, vmem_need + vmem_need // 2 + (4 << 20)))

    out = pl.pallas_call(
        value_net_kernel,
        out_shape=out_shape,
        grid_spec=pltpu.PrefetchScalarGridSpec(
            num_scalar_prefetch=0,
            grid=(tiles,),
            in_specs=in_specs,
            out_specs=out_specs,
        ),
        compiler_params=pltpu.CompilerParams(
            dimension_semantics=("parallel",),   # batch tiles shard across v7x cores
            vmem_limit_bytes=vmem_limit,
        ),
        cost_estimate=cost,
    )(state, w1c, b1, w2c, b2, w3, b3)

    # (tiles, 1, bt) lane-major rows -> (B, 1) column.  Any tail rows past B hold
    # garbage from the partial trailing block; rows are independent and sliced off.
    return out.reshape(tiles * bt, 1)[:B]


def value_network_forward(state, params, *, batch_tile=None,
                          weight_dtype=jnp.bfloat16, num_cores=None,
                          vmem_capacity_bytes=None):
    """state: (B, state_dim), float32 or bfloat16 (bf16 is fed straight to the MXU and
    halves the streamed HBM bytes).  Returns (B, 1) float32.

    weight_dtype sets the MXU input precision for W1/W2 (accumulation is always f32);
    pass jnp.float32 for bit-for-bit parity with the all-f32 PyTorch forward, or
    jnp.float8_e4m3fn on v7x (fp8 MXU) when accuracy allows.
    """
    return _forward_impl(state, params, batch_tile=batch_tile,
                         weight_dtype=weight_dtype, num_cores=num_cores,
                         vmem_capacity=vmem_capacity_bytes)


# -------------------------------------------------------------- params & reference


def init_value_network_params(key, state_dim, hidden_dim, init_w=0.003):
    """Mirror of the PyTorch module's init (float32 master params):
       - linear1/linear2: U(-1/sqrt(fan_in), 1/sqrt(fan_in))  (default nn.Linear init)
       - linear3: U(-init_w, init_w) for weight and bias.
       W1/W2 are (in_features, out_features); W3 is a (1, hidden) row; b3 is (1, 1)."""
    k1, k2, k3, k4, k5, k6 = jax.random.split(key, 6)

    bound1 = 1.0 / math.sqrt(state_dim)
    w1 = jax.random.uniform(k1, (state_dim, hidden_dim), jnp.float32, -bound1, bound1)
    b1 = jax.random.uniform(k2, (1, hidden_dim), jnp.float32, -bound1, bound1)

    bound2 = 1.0 / math.sqrt(hidden_dim)
    w2 = jax.random.uniform(k3, (hidden_dim, hidden_dim), jnp.float32, -bound2, bound2)
    b2 = jax.random.uniform(k4, (1, hidden_dim), jnp.float32, -bound2, bound2)

    w3 = jax.random.uniform(k5, (1, hidden_dim), jnp.float32, -init_w, init_w)
    b3 = jax.random.uniform(k6, (1, 1), jnp.float32, -init_w, init_w)

    return (w1, b1, w2, b2, w3, b3)


def value_network_ref(state, params, weight_dtype=jnp.float32):
    """Pure-JAX reference.  weight_dtype=jnp.bfloat16 mirrors the kernel's MXU input
    precision (f32 accumulation) for tight-tolerance checking."""
    w1, b1, w2, b2, w3, b3 = params

    def mm(x, w):
        return jnp.dot(x.astype(weight_dtype).astype(jnp.float32),
                       w.astype(weight_dtype).astype(jnp.float32))

    h1 = jnp.maximum(mm(state, w1) + b1, 0.0)
    h2 = jnp.maximum(mm(h1, w2) + b2, 0.0)
    return jnp.sum(h2 * w3, axis=-1, keepdims=True) + b3


if __name__ == "__main__":
    # Small demo shapes consistent with the module (at these sizes the kernel is
    # launch-overhead-bound; it pays off with many states stacked in one batch).
    batch, state_dim, hidden_dim = 8, 16, 32

    key = jax.random.PRNGKey(0)
    k_state, k_params = jax.random.split(key)

    state = jax.random.normal(k_state, (batch, state_dim), jnp.float32)
    params = init_value_network_params(k_params, state_dim, hidden_dim, init_w=0.003)

    out = jax.block_until_ready(value_network_forward(state, params))
    assert out.shape == (batch, 1), out.shape

    # Tight check vs a reference using the same bf16 MXU-input precision.  Tolerance
    # left a little loose: longer f32 accumulations of bf16 products diverge slightly
    # for larger hidden_dim.
    ref_bf16 = value_network_ref(state, params, weight_dtype=jnp.bfloat16)
    assert jnp.allclose(out, ref_bf16, atol=1e-4, rtol=1e-3), (out, ref_bf16)

    # Loose check vs the pure-float32 forward (original PyTorch semantics).
    ref_f32 = value_network_ref(state, params)
    assert jnp.allclose(out, ref_f32, atol=1e-2, rtol=5e-2), (out, ref_f32)

    # Ragged batch, default (single-tile) path: exercises the no-pad partial block.
    big_state = jax.random.normal(k_state, (300, state_dim), jnp.float32)
    big_out = jax.block_until_ready(value_network_forward(big_state, params))
    big_ref = value_network_ref(big_state, params, weight_dtype=jnp.bfloat16)
    assert big_out.shape == (300, 1), big_out.shape
    assert jnp.allclose(big_out, big_ref, atol=1e-4, rtol=1e-3), (big_out, big_ref)

    # Ragged batch, multi-tile path: partial trailing block + lane-dense row stores.
    tiled_out = jax.block_until_ready(
        value_network_forward(big_state, params, batch_tile=128))
    assert tiled_out.shape == (300, 1), tiled_out.shape
    assert jnp.allclose(tiled_out, big_ref, atol=1e-4, rtol=1e-3), (tiled_out, big_ref)

    print("KERNEL_OK")
</pallas_src>

<mosaic_0001>
module attributes {stable_mosaic.version = 11 : i64} {
  func.func @value_net_kernel(%arg0: i32, %arg1: memref<8x16xf32, #tpu.memory_space<vmem>>, %arg2: memref<16x128xbf16, #tpu.memory_space<vmem>>, %arg3: memref<1x128xf32, #tpu.memory_space<vmem>>, %arg4: memref<128x128xbf16, #tpu.memory_space<vmem>>, %arg5: memref<1x128xf32, #tpu.memory_space<vmem>>, %arg6: memref<1x128xf32, #tpu.memory_space<vmem>>, %arg7: memref<1x1xf32, #tpu.memory_space<vmem>>, %arg8: memref<1x1x8xf32, #tpu.memory_space<vmem>>) attributes {dimension_semantics = [#tpu.dimension_semantics<parallel>], iteration_bounds = array<i64: 1>, scalar_prefetch = 0 : i64, scratch_operands = 0 : i64, tpu.core_type = #tpu.core_type<tc>, window_params = [{transform_indices = @transform_0, window_bounds = array<i64: 8, 16>}, {pipeline_mode = #tpu.pipeline_mode<synchronous>, transform_indices = @transform_1, window_bounds = array<i64: 16, 128>}, {pipeline_mode = #tpu.pipeline_mode<synchronous>, transform_indices = @transform_2, window_bounds = array<i64: 1, 128>}, {pipeline_mode = #tpu.pipeline_mode<synchronous>, transform_indices = @transform_3, window_bounds = array<i64: 128, 128>}, {pipeline_mode = #tpu.pipeline_mode<synchronous>, transform_indices = @transform_4, window_bounds = array<i64: 1, 128>}, {pipeline_mode = #tpu.pipeline_mode<synchronous>, transform_indices = @transform_5, window_bounds = array<i64: 1, 128>}, {pipeline_mode = #tpu.pipeline_mode<synchronous>, transform_indices = @transform_6, window_bounds = array<i64: 1, 1>}, {transform_indices = @transform_7, window_bounds = array<i64: 1, 1, 8>}]} {
    %c0 = arith.constant 0 : index
    %c0_0 = arith.constant 0 : index
    %0 = vector.load %arg1[%c0, %c0_0] : memref<8x16xf32, #tpu.memory_space<vmem>>, vector<8x16xf32>
    %1 = arith.truncf %0 : vector<8x16xf32> to vector<8x16xbf16>
    %c0_1 = arith.constant 0 : index
    %c0_2 = arith.constant 0 : index
    %2 = vector.load %arg2[%c0_1, %c0_2] : memref<16x128xbf16, #tpu.memory_space<vmem>>, vector<16x128xbf16>
    %cst = arith.constant dense<0.000000e+00> : vector<8x128xf32>
    %3 = tpu.matmul %1, %2, %cst {dimension_numbers = #tpu.dot_dimension_numbers<[1], [0], [0], [1], [0, 0, 1, 1], [], []>} : vector<8x16xbf16>, vector<16x128xbf16>, vector<8x128xf32> -> vector<8x128xf32>
    %c0_3 = arith.constant 0 : index
    %c0_4 = arith.constant 0 : index
    %4 = vector.load %arg3[%c0_3, %c0_4] : memref<1x128xf32, #tpu.memory_space<vmem>>, vector<1x128xf32>
    %5 = vector.broadcast %4 : vector<1x128xf32> to vector<8x128xf32>
    %6 = arith.addf %3, %5 : vector<8x128xf32>
    %cst_5 = arith.constant 0.000000e+00 : f32
    %7 = vector.broadcast %cst_5 : f32 to vector<8x128xf32>
    %8 = arith.maximumf %6, %7 : vector<8x128xf32>
    %9 = arith.truncf %8 : vector<8x128xf32> to vector<8x128xbf16>
    %c0_6 = arith.constant 0 : index
    %c0_7 = arith.constant 0 : index
    %10 = vector.load %arg4[%c0_6, %c0_7] : memref<128x128xbf16, #tpu.memory_space<vmem>>, vector<128x128xbf16>
    %cst_8 = arith.constant dense<0.000000e+00> : vector<8x128xf32>
    %11 = tpu.matmul %9, %10, %cst_8 {dimension_numbers = #tpu.dot_dimension_numbers<[1], [0], [0], [1], [0, 0, 1, 1], [], []>} : vector<8x128xbf16>, vector<128x128xbf16>, vector<8x128xf32> -> vector<8x128xf32>
    %c0_9 = arith.constant 0 : index
    %c0_10 = arith.constant 0 : index
    %12 = vector.load %arg5[%c0_9, %c0_10] : memref<1x128xf32, #tpu.memory_space<vmem>>, vector<1x128xf32>
    %13 = vector.broadcast %12 : vector<1x128xf32> to vector<8x128xf32>
    %14 = arith.addf %11, %13 : vector<8x128xf32>
    %cst_11 = arith.constant 0.000000e+00 : f32
    %15 = vector.broadcast %cst_11 : f32 to vector<8x128xf32>
    %16 = arith.maximumf %14, %15 : vector<8x128xf32>
    %c0_12 = arith.constant 0 : index
    %c0_13 = arith.constant 0 : index
    %17 = vector.load %arg6[%c0_12, %c0_13] : memref<1x128xf32, #tpu.memory_space<vmem>>, vector<1x128xf32>
    %18 = tpu.transpose %16, [1, 0] : vector<8x128xf32> -> vector<128x8xf32>
    %cst_14 = arith.constant dense<0.000000e+00> : vector<1x8xf32>
    %19 = tpu.matmul %17, %18, %cst_14 {dimension_numbers = #tpu.dot_dimension_numbers<[1], [0], [0], [1], [0, 0, 1, 1], [], []>} : vector<1x128xf32>, vector<128x8xf32>, vector<1x8xf32> -> vector<1x8xf32>
    %c0_15 = arith.constant 0 : index
    %c0_16 = arith.constant 0 : index
    %20 = vector.load %arg7[%c0_15, %c0_16] : memref<1x1xf32, #tpu.memory_space<vmem>>, vector<1x1xf32>
    %21 = vector.broadcast %20 : vector<1x1xf32> to vector<1x8xf32>
    %22 = arith.addf %19, %21 : vector<1x8xf32>
    %c0_17 = arith.constant 0 : index
    %c0_18 = arith.constant 0 : index
    %c0_19 = arith.constant 0 : index
    %23 = vector.load %arg8[%c0_17, %c0_18, %c0_19] : memref<1x1x8xf32, #tpu.memory_space<vmem>>, vector<1x1x8xf32>
    %24 = vector.shape_cast %23 : vector<1x1x8xf32> to vector<1x8xf32>
    %25 = vector.shape_cast %22 : vector<1x8xf32> to vector<1x1x8xf32>
    tpu.vector_store %arg8[%c0_17, %c0_18, %c0_19], %25 {strides = array<i32>} : memref<1x1x8xf32, #tpu.memory_space<vmem>>, vector<1x1x8xf32>,
    return
  }
  func.func @transform_0(%arg0: i32) -> (i32, i32) {
    %c0_i32 = arith.constant 0 : i32
    %c0_i32_0 = arith.constant 0 : i32
    return %arg0, %c0_i32 : i32, i32
  }
  func.func @transform_1(%arg0: i32) -> (i32, i32) {
    %c0_i32 = arith.constant 0 : i32
    %c0_i32_0 = arith.constant 0 : i32
    %c0_i32_1 = arith.constant 0 : i32
    return %c0_i32, %c0_i32_0 : i32, i32
  }
  func.func @transform_2(%arg0: i32) -> (i32, i32) {
    %c0_i32 = arith.constant 0 : i32
    %c0_i32_0 = arith.constant 0 : i32
    %c0_i32_1 = arith.constant 0 : i32
    return %c0_i32, %c0_i32_0 : i32, i32
  }
  func.func @transform_3(%arg0: i32) -> (i32, i32) {
    %c0_i32 = arith.constant 0 : i32
    %c0_i32_0 = arith.constant 0 : i32
    %c0_i32_1 = arith.constant 0 : i32
    return %c0_i32, %c0_i32_0 : i32, i32
  }
  func.func @transform_4(%arg0: i32) -> (i32, i32) {
    %c0_i32 = arith.constant 0 : i32
    %c0_i32_0 = arith.constant 0 : i32
    %c0_i32_1 = arith.constant 0 : i32
    return %c0_i32, %c0_i32_0 : i32, i32
  }
  func.func @transform_5(%arg0: i32) -> (i32, i32) {
    %c0_i32 = arith.constant 0 : i32
    %c0_i32_0 = arith.constant 0 : i32
    %c0_i32_1 = arith.constant 0 : i32
    return %c0_i32, %c0_i32_0 : i32, i32
  }
  func.func @transform_6(%arg0: i32) -> (i32, i32) {
    %c0_i32 = arith.constant 0 : i32
    %c0_i32_0 = arith.constant 0 : i32
    %c0_i32_1 = arith.constant 0 : i32
    return %c0_i32, %c0_i32_0 : i32, i32
  }
  func.func @transform_7(%arg0: i32) -> (i32, i32, i32) {
    %c0_i32 = arith.constant 0 : i32
    %c0_i32_0 = arith.constant 0 : i32
    %c0_i32_1 = arith.constant 0 : i32
    return %arg0, %c0_i32, %c0_i32_0 : i32, i32, i32
  }
}

</mosaic_0001>

<bundles_post_ra>
// kernel: tpu_custom_call.1
= control target key start
LH: loop header
LB: loop body
LE: loop exit
PB: predicated region body
PF: predicated region fallthrough
CT: control target
= control target key end

     0   :  { %s577_s0 = inlined_call_operand.hbm [shape: f32[8,16], index: 0, kind: input, shape index: {}]   ;;  %s578_s1 = inlined_call_operand.hbm [shape: bf16[16,128], index: 1, kind: input, shape index: {}]   ;;  %s579_s2 = inlined_call_operand.vmem [shape: f32[1,128], index: 2, kind: input, shape index: {}]   ;;  %s580_s3 = inlined_call_operand.hbm [shape: bf16[128,128], index: 3, kind: input, shape index: {}]   ;;  %s581_s4 = inlined_call_operand.vmem [shape: f32[1,128], index: 4, kind: input, shape index: {}]   ;;  %s582_s5 = inlined_call_operand.vmem [shape: f32[1,128], index: 5, kind: input, shape index: {}]   ;;  %s583_s6 = inlined_call_operand.<no memory space> [shape: f32[1,1], index: 6, kind: input, shape index: {}]   ;;  %s584_s7 = inlined_call_operand.hbm [shape: f32[1,1,8], index: 7, kind: output, shape index: {}]  }
   0x1   :  { %v12_v0 = vstv %s583_s6 }
   0x2   :  { %13 = vst [vmem:[#allocation2] sm:$0x1] %v12_v0 }
   0x3   :  { %14 = vsyncpa [#allocation4], 0 }
   0x4   :  { %15 = vsyncpa [#allocation7], 0 }
   0x5   :  { %16 = vsyncpa [#allocation5], 0  ;;  %s504_s26 = smov [#allocation6]  }
   0x6   :  { %s32_s27 = sshll.u32 %s504_s26, 4  ;;  %s33_s27 = int_to_ptr.vmem [resolvable:$true] %s32_s27 }
   0x7   :  { %s426_s28 = scalar_lea.vmem %s33_s27, 128  ;;  %p431_p1 = scmp.lt.s32.totalorder %s33_s27, %s33_s27 }
   0x8   :  { %p427_p0 = scmp.ne.s32.totalorder %s33_s27, %s426_s28  ;;  %p432_p2 = scmp.lt.s32.totalorder %s426_s28, %s426_s28 }
   0xa   :  { %p433_p3 = por %p432_p2, %p431_p1 }
   0xc   :  { %p434_p4 = pnand %p433_p3, %p427_p0 }
   0xe   :  { %437 = shalt.err (!%p434_p4)
}
   0xf   :  { %s505_s29 = smov 64   ;;  %s506_s30 = smov 4  }
  0x10   :  { %38 = dma.hbm_to_vmem [thread:$0]  %s578_s1, 128, %s33_s27, [#allocation7], %s505_s29, %s505_s29, %s506_s30  }
  0x11   :  { %s507_s6 = smov [#allocation3]   ;;  %s508_s11 = smov [#allocation8]  }
  0x12   :  { %s23_s10 = sshll.u32 %s507_s6, 4  ;;  %s46_s12 = sshll.u32 %s508_s11, 4  ;;  %s24_s10 = int_to_ptr.vmem [resolvable:$true] %s23_s10  ;;  %s47_s12 = int_to_ptr.vmem [resolvable:$true] %s46_s12 }
  0x13   :  { %s446_s13 = scalar_lea.vmem %s24_s10, 128  ;;  %p451_p6 = scmp.lt.s32.totalorder %s24_s10, %s24_s10 }
  0x14   :  { %p447_p5 = scmp.ne.s32.totalorder %s24_s10, %s446_s13  ;;  %p452_p7 = scmp.lt.s32.totalorder %s446_s13, %s446_s13 }
  0x16   :  { %p453_p8 = por %p452_p7, %p451_p6 }
  0x18   :  { %p454_p9 = pnand %p453_p8, %p447_p5 }
  0x1a   :  { %457 = shalt.err (!%p454_p9)
}
  0x1b   :  { %26 = dma.hbm_to_vmem [thread:$0]  %s577_s0, 128, %s24_s10, [#allocation4]  }
  0x1c   :  { %s466_s16 = scalar_lea.vmem %s47_s12, 1024  ;;  %p471_p11 = scmp.lt.s32.totalorder %s47_s12, %s47_s12 }
  0x1d   :  { %p467_p10 = scmp.ne.s32.totalorder %s47_s12, %s466_s16  ;;  %p472_p12 = scmp.lt.s32.totalorder %s466_s16, %s466_s16 }
  0x1f   :  { %p473_p13 = por %p472_p12, %p471_p11 }
  0x21   :  { %p474_p0 = pnand %p473_p13, %p467_p10 }
  0x23   :  { %477 = shalt.err (!%p474_p0)
}
  0x24   :  { %52 = dma.hbm_to_vmem [thread:$0]  %s580_s3, 1024, %s47_s12, [#allocation7], %s505_s29, %s505_s29, %s506_s30  }
  0x25   :  { %498 = dma.done.wait [#allocation4], 128  }
  0x26   :  { %499 = vsyncadd [#allocation4], 4294967168 }
  0x27   :  { %500 = dma.done.wait [#allocation7], 1152  }
  0x28   :  { %501 = vsyncadd [#allocation7], 4294966144  ;;  %v509_v1 = vmov 0.0   ;;  %vm510_vm0 = vmmov 0   ;;  %v409_v2 = vld [vmem:[#allocation6] sm:$0xff]   ;;  %v69_v3 = vld [vmem:[#allocation3] sm:$0xff]  ;;  %v251_v31 = vlaneseq }
  0x29   :  { %368 = vmatprep.subr.bf16.mxu0 %v509_v1  ;;  %370 = vmatprep.mubr.msk.bf16.mxu0 %vm510_vm0, %v509_v1  ;;  %v70_v4 = vpack.c.bf16 %v69_v3, %v69_v3  ;;  %vm86_vm1 = vcmask 130048   ;;  %v410_v5 = vld [vmem:[#allocation8 + $0x38] sm:$0xff]   ;;  %v411_v6 = vld [vmem:[#allocation8 + $0x30] sm:$0xff]   ;;  %v412_v7 = vld [vmem:[#allocation8 + $0x28] sm:$0xff]   ;;  %v511_v22 = vmov 0   ;;  %s512_s21 = smov [#allocation9]  }
  0x2a   :  { %374 = vmatprep.subr.bf16.mxu1 %v509_v1  ;;  %390 = vmatprep.mubr.msk.bf16.mxu1 %vm510_vm0, %v509_v1  ;;  %v413_v8 = vld [vmem:[#allocation8 + $0x20] sm:$0xff]   ;;  %v414_v9 = vld [vmem:[#allocation8 + $0x18] sm:$0xff]   ;;  %v415_v10 = vld [vmem:[#allocation8 + $0x10] sm:$0xff]   ;;  %v252_v32 = vshrl.u32 %v251_v31, 7  ;;  %s333_s22 = sshll.u32 %s512_s21, 4  ;;  %vm325_vm2 = vcmask 57344   ;;  %s334_s22 = int_to_ptr.vmem [resolvable:$true] %s333_s22 }
  0x2b   :  { %369 = vmatpush3.bf16.msra.mxu0 %v409_v2  ;;  %375 = vmatpush3.bf16.msra.mxu1 %v410_v5  ;;  %v416_v11 = vld [vmem:[#allocation8 + $0x8] sm:$0xff]   ;;  %v417_v12 = vld [vmem:[#allocation8] sm:$0xff]   ;;  %s482_s23 = scalar_lea.vmem %s334_s22, 32  ;;  %p483_p2 = scmp.lt.s32.totalorder %s334_s22, %s334_s22 }
  0x2c   :  { %394 = vmatprep.subr.mxu0 %v509_v1  ;;  %376 = vmatprep.subr.bf16.mxu1 %v509_v1  ;;  %v343_v13 = vld [vmem:[%s579_s2] ss:$0 sm:$0xff]  ;;  %v253_v33 = vsub.s32 0, %v252_v32 }
  0x2d   :  { %v245_v21 = vld [vmem:[#allocation2] sm:$0x1]  ;;  %408 = vset.pattern.permute.xlu0 %v511_v22 }
  0x2e   :  { %371 = vmatmul.mubr.msk.bf16.vlgmr.msra.gmra.mxu0 %vm86_vm1, %v70_v4  ;;  %248 = vperm.xlu0 %408, %v245_v21   ;;  %v346_v23 = vld [vmem:[%s581_s4] ss:$0 sm:$0xff]  ;;  %s478_s4 = scalar_lea.vmem %s334_s22, 16 }
  0x2f   :  { %396 = vmatprep.mubr.msk.f32.mxu0 %vm510_vm0, %v509_v1  ;;  %377 = vmatpush3.bf16.msra.mxu1 %v411_v6  ;;  %v244_v29 = vld [vmem:[%s582_s5] sm:$0x1]  ;;  %p479_p1 = scmp.ne.s32.totalorder %s334_s22, %s478_s4  ;;  %p484_p3 = scmp.lt.s32.totalorder %s482_s23, %s478_s4 }
  0x30   :  { %378 = vmatprep.subr.bf16.mxu1 %v509_v1 }
  0x31   :  { %p485_p4 = por %p484_p3, %p483_p2 }
  0x33   :  { %379 = vmatpush3.bf16.msra.mxu1 %v412_v7  ;;  %p486_p5 = pnand %p485_p4, %p479_p1 }
  0x34   :  { %380 = vmatprep.subr.bf16.mxu1 %v509_v1 }
  0x37   :  { %381 = vmatpush3.bf16.msra.mxu1 %v413_v8 }
  0x38   :  { %382 = vmatprep.subr.bf16.mxu1 %v509_v1 }
  0x3b   :  { %383 = vmatpush3.bf16.msra.mxu1 %v414_v9 }
  0x3c   :  { %384 = vmatprep.subr.bf16.mxu1 %v509_v1 }
  0x3f   :  { %385 = vmatpush3.bf16.msra.mxu1 %v415_v10 }
  0x40   :  { %386 = vmatprep.subr.bf16.mxu1 %v509_v1 }
  0x43   :  { %387 = vmatpush3.bf16.msra.mxu1 %v416_v11 }
  0x44   :  { %388 = vmatprep.subr.bf16.mxu1 %v509_v1 }
  0x47   :  { %389 = vmatpush3.bf16.msra.mxu1 %v417_v12 }
  0xa9   :  { %v249_v34 = vpop.permute.xlu0 %248 }
  0xaa   :  { %v254_v35 = vrot.slane %v249_v34, %v253_v33 }
  0xee   :  { %v124_v14 = vpop.f32.mrf.mxu0 }
  0xef   :  { %v125_v15 = vadd.f32 %v343_v13, %v124_v14 }
  0xf0   :  { %v372_v16 = vpop.f32.mrf.mxu0 }
  0xf1   :  { %v130_v17 = vmax.f32 %v125_v15, 0.0 }
  0xf2   :  { %v127_v18 = vpop.f32.mrf.mxu0 }
  0xf3   :  { %v131_v19 = vpack.c.bf16 %v130_v17, %v130_v17 }
  0xf4   :  { %v373_v20 = vpop.f32.mrf.mxu0 }
  0xf5   :  { %391 = vmatmul.mubr.bf16.vlgmr.msra.gmra.mxu1 %v131_v19 }
 0x1b5   :  { %v237_v24 = vpop.f32.mrf.mxu1 }
 0x1b6   :  { %v238_v25 = vadd.f32 %v346_v23, %v237_v24 }
 0x1b7   :  { %v392_v26 = vpop.f32.mrf.mxu1 }
 0x1b8   :  { %v243_v27 = vmax.f32 %v238_v25, 0.0 }
 0x1b9   :  { %v240_v28 = vpop.f32.mrf.mxu1 }
 0x1ba   :  { %395 = vmatpush3.xpose.msra.mxu0 %v243_v27 }
 0x1bb   :  { %v393_v30 = vpop.f32.mrf.mxu1 }
 0x1bd   :  { %397 = vmatmul.mubr.f32.vlgmr.msra.gmra.mxu0 %v244_v29 }
 0x27d   :  { %v321_v36 = vpop.f32.mrf.mxu0 }
 0x27e   :  { %v322_v37 = vadd.f32 %v321_v36, %v254_v35 }
 0x27f   :  { %v398_v38 = vpop.f32.mrf.mxu0 }
 0x280   :  { %326 = vst.msk [vmem:[#allocation9] sm:$0x1] %vm325_vm2, %v322_v37 }
 0x281   :  { %489 = shalt.err (!%p486_p5)
}
 0x282   :  { %336 = dma.vmem_to_hbm [thread:$0]  %s334_s22, 16, %s584_s7, [#allocation5]  }
 0x283   :  { %502 = dma.done.wait [#allocation5], 16  }
 0x284   :  { %503 = vsyncadd [#allocation5], 4294967280 }
 0x285   :  { %340 = vsyncpa [#allocation4], 1 }
 0x286   :  { %341 = vsyncpa [#allocation7], 1 }
 0x287   :  { %342 = vsyncpa [#allocation5], 1 }

</bundles_post_ra>
